<compile_context>
chip_gen: v6e
topology: v6e:2x2x1
jax: 0.10.0
libtpu: 0.0.40
codegen_flags: <defaults>
</compile_context>

<pallas_src>
import math

import jax
import jax.numpy as jnp
from jax.experimental import pallas as pl
from jax.experimental.pallas import tpu as pltpu

_INV_SQRT2 = 0.7071067811865475244  # 1/sqrt(2)
_LANES = 128                        # vreg lane width


# ----------------------------- Pallas kernel ------------------------------ #
def _mzi45_kernel(x1_ref, x2_ref, y1_ref, y2_ref):
    a = x1_ref[...]
    b = x2_ref[...]
    scale = jnp.asarray(_INV_SQRT2, dtype=a.dtype)
    y1_ref[...] = (a + b) * scale
    y2_ref[...] = (b - a) * scale


# ------------------------------ wrapper ----------------------------------- #
def mzi45_pallas(x1, x2, *, tile_rows=2048):
    """Elementwise MZI forward. x1, x2: same shape/dtype. Returns (y1, y2)."""
    assert x1.shape == x2.shape, "x1/x2 shape mismatch"
    assert x1.dtype == x2.dtype, "x1/x2 dtype mismatch"
    dtype = x1.dtype
    assert jnp.issubdtype(dtype, jnp.floating), (
        "MZI45 requires a floating-point dtype (integer scale would truncate to 0)")

    orig_shape = x1.shape
    n = x1.size
    itemsize = jnp.dtype(dtype).itemsize

    # dtype-aware sublane packing: 8 rows for 4B, 16 for 2B, 32 for 1B dtypes.
    sub = 8 * max(1, 4 // itemsize)

    # Lane-pad only when strictly necessary (n not a multiple of 128).
    padded_n = pl.cdiv(n, _LANES) * _LANES
    rows = padded_n // _LANES
    needs_pad = padded_n != n

    def _to_2d(a):
        flat = a.reshape(-1)
        if needs_pad:
            flat = jnp.pad(flat, (0, padded_n - n))
        return flat.reshape(rows, _LANES)

    x1_2d = _to_2d(x1)
    x2_2d = _to_2d(x2)

    # Tile selection: multiple of the packed sublane unit, at least 2 grid
    # steps when the slab is big enough (pipelining + v7x second TC), ragged
    # final block handled by the cdiv grid (no row-padding round trip).
    tile_rows = max(sub, (tile_rows // sub) * sub)
    if rows < 2 * sub:
        tile = rows  # tiny input: single block with full-extent shape
    else:
        tile = min(tile_rows, max(sub, ((rows // 2) // sub) * sub))
    grid = (pl.cdiv(rows, tile),)

    block = pl.BlockSpec((tile, _LANES), lambda i: (i, 0))

    cost = pl.CostEstimate(
        flops=4 * padded_n,                       # add, sub, 2 scales
        transcendentals=0,
        bytes_accessed=4 * padded_n * itemsize,   # 2 inputs + 2 outputs
    )

    # 4 refs, double-buffered. Only raise the scoped-VMEM limit if a custom
    # tile would exceed v5e's conservative 16 MiB default; cap under v7x's
    # 64 MiB physical VMEM.
    vmem_bytes = 4 * 2 * tile * _LANES * itemsize
    vmem_limit = None
    if vmem_bytes > 12 * 1024 * 1024:
        vmem_limit = min(vmem_bytes + (4 << 20), 60 * 1024 * 1024)

    y1_2d, y2_2d = pl.pallas_call(
        _mzi45_kernel,
        out_shape=(
            jax.ShapeDtypeStruct((rows, _LANES), dtype),
            jax.ShapeDtypeStruct((rows, _LANES), dtype),
        ),
        grid=grid,
        in_specs=[block, block],
        out_specs=(block, block),
        compiler_params=pltpu.CompilerParams(
            dimension_semantics=("parallel",),
            vmem_limit_bytes=vmem_limit,
        ),
        cost_estimate=cost,
    )(x1_2d, x2_2d)

    def _back(y):
        if needs_pad:
            return y.reshape(-1)[:n].reshape(orig_shape)
        return y.reshape(orig_shape)   # free reshape, no slice copy

    return _back(y1_2d), _back(y2_2d)


# --------------------------------- main ------------------------------------ #
if __name__ == "__main__":
    key = jax.random.PRNGKey(0)
    sqrt2 = math.sqrt(2.0)

    def _check(shape):
        k = jax.random.fold_in(key, hash(shape) & 0x7FFFFFFF)
        k1, k2 = jax.random.split(k)
        x1 = jax.random.normal(k1, shape, dtype=jnp.float32)
        x2 = jax.random.normal(k2, shape, dtype=jnp.float32)
        y1, y2 = mzi45_pallas(x1, x2)
        y1 = jax.block_until_ready(y1)
        y2 = jax.block_until_ready(y2)
        y1_ref = (x1 + x2) / sqrt2
        y2_ref = (x2 - x1) / sqrt2
        assert y1.shape == shape and y2.shape == shape
        assert jnp.allclose(y1, y1_ref, rtol=1e-6, atol=1e-6), f"y1 mismatch {shape}"
        assert jnp.allclose(y2, y2_ref, rtol=1e-6, atol=1e-6), f"y2 mismatch {shape}"

    # Primary small shape (lane-aligned fast path, 2 grid steps).
    _check((2, 4, 16, 16))
    # Ragged final block (rows=40, tile=16, grid=3).
    _check((40, 128))
    # Non-lane-aligned shape exercising the pad/unpad slow path.
    _check((5, 7, 9))

    print("KERNEL_OK")
</pallas_src>

<mosaic_0001>
module attributes {stable_mosaic.version = 11 : i64} {
  func.func @_mzi45_kernel(%arg0: i32, %arg1: memref<8x128xf32, #tpu.memory_space<vmem>>, %arg2: memref<8x128xf32, #tpu.memory_space<vmem>>, %arg3: memref<8x128xf32, #tpu.memory_space<vmem>>, %arg4: memref<8x128xf32, #tpu.memory_space<vmem>>) attributes {dimension_semantics = [#tpu.dimension_semantics<parallel>], iteration_bounds = array<i64: 2>, scalar_prefetch = 0 : i64, scratch_operands = 0 : i64, tpu.core_type = #tpu.core_type<tc>, window_params = [{transform_indices = @transform_0, window_bounds = array<i64: 8, 128>}, {transform_indices = @transform_1, window_bounds = array<i64: 8, 128>}, {transform_indices = @transform_2, window_bounds = array<i64: 8, 128>}, {transform_indices = @transform_3, window_bounds = array<i64: 8, 128>}]} {
    %c0 = arith.constant 0 : index
    %c0_0 = arith.constant 0 : index
    %0 = vector.load %arg1[%c0, %c0_0] : memref<8x128xf32, #tpu.memory_space<vmem>>, vector<8x128xf32>
    %c0_1 = arith.constant 0 : index
    %c0_2 = arith.constant 0 : index
    %1 = vector.load %arg2[%c0_1, %c0_2] : memref<8x128xf32, #tpu.memory_space<vmem>>, vector<8x128xf32>
    %2 = arith.addf %0, %1 : vector<8x128xf32>
    %cst = arith.constant 0.707106769 : f32
    %3 = vector.broadcast %cst : f32 to vector<8x128xf32>
    %4 = arith.mulf %2, %3 : vector<8x128xf32>
    %c0_3 = arith.constant 0 : index
    %c0_4 = arith.constant 0 : index
    %5 = vector.load %arg3[%c0_3, %c0_4] : memref<8x128xf32, #tpu.memory_space<vmem>>, vector<8x128xf32>
    tpu.vector_store %arg3[%c0_3, %c0_4], %4 {strides = array<i32>} : memref<8x128xf32, #tpu.memory_space<vmem>>, vector<8x128xf32>,
    %6 = arith.subf %1, %0 : vector<8x128xf32>
    %cst_5 = arith.constant 0.707106769 : f32
    %7 = vector.broadcast %cst_5 : f32 to vector<8x128xf32>
    %8 = arith.mulf %6, %7 : vector<8x128xf32>
    %c0_6 = arith.constant 0 : index
    %c0_7 = arith.constant 0 : index
    %9 = vector.load %arg4[%c0_6, %c0_7] : memref<8x128xf32, #tpu.memory_space<vmem>>, vector<8x128xf32>
    tpu.vector_store %arg4[%c0_6, %c0_7], %8 {strides = array<i32>} : memref<8x128xf32, #tpu.memory_space<vmem>>, vector<8x128xf32>,
    return
  }
  func.func @transform_0(%arg0: i32) -> (i32, i32) {
    %c0_i32 = arith.constant 0 : i32
    %c0_i32_0 = arith.constant 0 : i32
    return %arg0, %c0_i32 : i32, i32
  }
  func.func @transform_1(%arg0: i32) -> (i32, i32) {
    %c0_i32 = arith.constant 0 : i32
    %c0_i32_0 = arith.constant 0 : i32
    return %arg0, %c0_i32 : i32, i32
  }
  func.func @transform_2(%arg0: i32) -> (i32, i32) {
    %c0_i32 = arith.constant 0 : i32
    %c0_i32_0 = arith.constant 0 : i32
    return %arg0, %c0_i32 : i32, i32
  }
  func.func @transform_3(%arg0: i32) -> (i32, i32) {
    %c0_i32 = arith.constant 0 : i32
    %c0_i32_0 = arith.constant 0 : i32
    return %arg0, %c0_i32 : i32, i32
  }
}

</mosaic_0001>

<bundles_post_ra>
// kernel: tpu_custom_call.1
= control target key start
LH: loop header
LB: loop body
LE: loop exit
PB: predicated region body
PF: predicated region fallthrough
CT: control target
= control target key end

     0   :  { %9 = vsyncpa [#allocation3], 0  ;;  %s887_s0 = inlined_call_operand.hbm [shape: f32[16,128], index: 0, kind: input, shape index: {}]   ;;  %s888_s1 = inlined_call_operand.hbm [shape: f32[16,128], index: 1, kind: input, shape index: {}]   ;;  %s889_s2 = inlined_call_operand.hbm [shape: f32[16,128], index: 2, kind: output, shape index: {0}]   ;;  %s890_s3 = inlined_call_operand.hbm [shape: f32[16,128], index: 3, kind: output, shape index: {1}]  }
   0x1   :  { %11 = vsyncpa [#allocation3 + $0x1], 0 }
   0x2   :  { %12 = vsyncpa [#allocation6], 0 }
   0x3   :  { %14 = vsyncpa [#allocation6 + $0x1], 0 }
   0x4   :  { %15 = vsyncpa [#allocation4], 0 }
   0x5   :  { %17 = vsyncpa [#allocation4 + $0x1], 0 }
   0x6   :  { %18 = vsyncpa [#allocation9], 0 }
   0x7   :  { %20 = vsyncpa [#allocation9 + $0x1], 0  ;;  %s653_s12 = smov 0   ;;  %s655_s13 = smov 0  }
   0x8   :  { %s657_s14 = smov 0   ;;  %s659_s15 = smov 0  }
   0x9 LB: > { %s674_s16 = sadd.s32 4294967295, %s627_s15   ;;  %s399_s17 = sadd.s32 4294967294, %s627_s15   ;;  %s627_s15 = sphi %s659_s15, %s909_s15   ;;  %s623_s14 = sphi %s657_s14, %s908_s14   ;;  %s619_s13 = sphi %s655_s13, %s907_s13   ;;  %s615_s12 = sphi %s653_s12, %s906_s12  }
   0xa   : > { %s678_s18 = sadd.s32 1, %s627_s15   ;;  %s33_s19 = sadd.s32 1, %s623_s14 }
   0xb   : > { %s30_s20 = ssub.s32 %s627_s15, %s678_s18  ;;  %p40_p0 = scmp.ne.s32.totalorder %s623_s14, %s619_s13 }
   0xc   : > { %p31_p1 = scmp.eq.s32.totalorder %s30_s20, 0  ;;  %p41_p2 = scmp.eq.s32.totalorder %s627_s15, 0 }
   0xd   : > { %p46_p3 = scmp.ne.s32.totalorder %s619_s13, %s615_s12  ;;  %p47_p4 = scmp.eq.s32.totalorder %s674_s16, 0 }
   0xe   : > { %s690_s21 = scalar_select %p31_p1, %s623_s14, %s33_s19  }
   0xf   : > { %p692_p5 = por %p41_p2, %p40_p0  ;;  %p696_p6 = por %p47_p4, %p46_p3 }
  0x10   : > { %p96_p7 = scmp.eq.s32.totalorder %s674_s16, 1  ;;  %p102_p8 = scmp.eq.s32.totalorder %s399_s17, 1 }
  0x11   : > { %s894_s23 = scalar_select %p696_p6, 1, 0 }
  0x12   : > { %p439_p10 = scmp.lt.s32.totalorder %s627_s15, 2  ;;  %p703_p11 = por %p96_p7, %p40_p0 }
  0x13   : > { %p707_p12 = por %p102_p8, %p46_p3  ;;  %s712_s26 = sand.u32 1, %s623_s14  }
  0x14   : > { %s895_s24 = scalar_select %p703_p11, 1, 0 }
  0x15   : > { %s896_s25 = scalar_select %p707_p12, 1, 0 }
  0x16   : > { %s403_s27 = sshll.u32 %s627_s15, 7  ;;  %s402_s28 = sshll.u32 %s712_s26, 3 }
  0x17   : > { %s721_s4 = scalar_lea.hbm %s887_s0, %s403_s27  ;;  %s152_s5 = scalar_lea.vmem [#allocation2], %s402_s28 }
  0x18   : > { %s159_s6 = sshll.u32 %s152_s5, 4  ;;  %p727_p13 = pnand %p439_p10, %p692_p5  ;;  %s731_s6 = int_to_ptr.vmem [resolvable:$true] %s159_s6 }
  0x19   : > { %s149_s8 = scalar_lea.sflag [#allocation3], %s712_s26  ;;  %s473_s9 = scalar_lea.hbm %s721_s4, 128 }
  0x1a   : > { %p474_p2 = scmp.ne.s32.totalorder %s721_s4, %s473_s9  ;;  %p475_p3 = pneg %p727_p13 }
  0x1b   : > { %s478_s17 = scalar_lea.hbm %s887_s0, 256  ;;  %p479_p5 = scmp.lt.s32.totalorder %s721_s4, %s887_s0 }
  0x1c   : > { %p476_p4 = pnand %p475_p3, %p474_p2  ;;  %p480_p8 = scmp.lt.s32.totalorder %s478_s17, %s473_s9 }
  0x1e   : > { %p477_p7 = pneg %p476_p4  ;;  %p481_p10 = por %p480_p8, %p479_p5 }
  0x20   : > { %p482_p9 = pnand %p481_p10, %p477_p7 }
  0x22   : > { %485 = shalt.err (!%p482_p9)
}
  0x23   : > { %s486_s22 = scalar_lea.vmem %s731_s6, 128  ;;  %s629_s29 = smov [#allocation2]  }
  0x24   : > { %p487_p0 = scmp.ne.s32.totalorder %s731_s6, %s486_s22  ;;  %s491_s30 = sshll.u32 %s629_s29, 4  ;;  %s492_s30 = int_to_ptr.vmem [resolvable:$false] %s491_s30 }
  0x25   : > { %s493_s5 = scalar_lea.vmem %s492_s30, 256  ;;  %p494_p1 = scmp.lt.s32.totalorder %s731_s6, %s492_s30 }
  0x26   : > { %p489_p2 = pnand %p487_p0, %p475_p3  ;;  %p495_p12 = scmp.lt.s32.totalorder %s493_s5, %s486_s22 }
  0x28   : > { %p490_p4 = pneg %p489_p2  ;;  %p496_p11 = por %p495_p12, %p494_p1 }
  0x2a   : > { %p497_p5 = pnand %p496_p11, %p490_p4 }
  0x2c   : > { %500 = shalt.err (!%p497_p5)
}
  0x2d   : > { %428 = dma.hbm_to_vmem [thread:$0]  (!%p727_p13), %s721_s4, 128, %s731_s6, %s149_s8  }
  0x2e   : > { %p898_p9 = scmp.lt.s32.totalorder %s627_s15, 3  ;;  %p899_p0 = scmp.ge.s32.totalorder %s627_s15, 1 }
  0x2f   : > { %s773_s17 = scalar_lea.hbm %s888_s1, %s403_s27  ;;  %s170_s19 = scalar_lea.vmem [#allocation5], %s402_s28 }
  0x30   : > { %p764_p7 = pnand %p899_p0, %p898_p9  ;;  %s177_s20 = sshll.u32 %s170_s19, 4  ;;  %s178_s20 = int_to_ptr.vmem [resolvable:$true] %s177_s20 }
  0x31   : > { %s167_s4 = scalar_lea.sflag [#allocation6], %s712_s26  ;;  %s501_s6 = scalar_lea.hbm %s773_s17, 128 }
  0x32   : > { %s900_s9 = scalar_select %p764_p7, 1, 0 }
  0x33   : > { %p502_p11 = scmp.ne.s32.totalorder %s773_s17, %s501_s6  ;;  %s506_s29 = scalar_lea.hbm %s888_s1, 256 }
  0x34   : > { %p507_p8 = scmp.lt.s32.totalorder %s773_s17, %s888_s1  ;;  %p508_p10 = scmp.lt.s32.totalorder %s506_s29, %s501_s6 }
  0x35   : > { %p504_p12 = pnand %p502_p11, %p475_p3 }
  0x36   : > { %p509_p2 = por %p508_p10, %p507_p8 }
  0x37   : > { %p505_p1 = pneg %p504_p12 }
  0x39   : > { %p510_p4 = pnand %p509_p2, %p505_p1 }
  0x3b   : > { %513 = shalt.err (!%p510_p4)
}
  0x3c   : > { %s514_s28 = scalar_lea.vmem %s178_s20, 128  ;;  %s630_s26 = smov [#allocation5]  }
  0x3d   : > { %p515_p5 = scmp.ne.s32.totalorder %s178_s20, %s514_s28  ;;  %s519_s5 = sshll.u32 %s630_s26, 4  ;;  %s520_s5 = int_to_ptr.vmem [resolvable:$false] %s519_s5 }
  0x3e   : > { %s521_s10 = scalar_lea.vmem %s520_s5, 256  ;;  %p522_p11 = scmp.lt.s32.totalorder %s178_s20, %s520_s5 }
  0x3f   : > { %p517_p9 = pnand %p515_p5, %p475_p3  ;;  %p523_p12 = scmp.lt.s32.totalorder %s521_s10, %s514_s28 }
  0x41   : > { %p518_p0 = pneg %p517_p9  ;;  %p524_p6 = por %p523_p12, %p522_p11 }
  0x43   : > { %p525_p7 = pnand %p524_p6, %p518_p0 }
  0x45   : > { %528 = shalt.err (!%p525_p7)
}
  0x46   : > { %431 = dma.hbm_to_vmem [thread:$0]  (!%p727_p13), %s773_s17, 128, %s178_s20, %s167_s4  }
  0x47   : > { %p901_p1 = scmp.ne.s32.totalorder %s900_s9, 0 }
  0x48   : > { %s799_s11 = sand.u32 (!%p901_p1), 1, %s619_s13   ;;  %p902_p3 = scmp.ne.s32.totalorder (!%p901_p1), %s894_s23, 0 }
  0x49   : > { %186 = sbr.rel (%p901_p1) target bundleno = 129 (0x81), region = 28  ;;  %s407_s19 = sshll.u32 (!%p901_p1), %s799_s11, 3 }
  0x4a   : > { %s189_s6 = scalar_lea.sflag (!%p901_p1), [#allocation3], %s799_s11  ;;  %s192_s8 = scalar_lea.vmem (!%p901_p1), [#allocation2], %s407_s19 }
  0x4e   : > { %598 = dma.done.wait (%p902_p3), %s189_s6, 128  }
  0x4f   : > { %600 = vsyncadd (%p902_p3), %s189_s6, 4294967168  ;;  %s198_s7 = scalar_lea.sflag [#allocation6], %s799_s11  ;;  %s201_s17 = scalar_lea.vmem [#allocation5], %s407_s19 }
  0x50   : > { %602 = dma.done.wait (%p902_p3), %s198_s7, 128  }
  0x51   : > { %604 = vsyncadd (%p902_p3), %s198_s7, 4294967168  ;;  %s226_s9 = scalar_lea.vmem [#allocation7], %s407_s19  ;;  %s233_s4 = scalar_lea.vmem [#allocation8], %s407_s19  ;;  %v234_v0 = vld [vmem:[%s192_s8] sm:$0xff]  ;;  %v235_v1 = vld [vmem:[%s201_s17] sm:$0xff] }
  0x52   : > { %s261_s20 = sshll.u32 %s226_s9, 4  ;;  %s274_s22 = sshll.u32 %s233_s4, 4  ;;  %v236_v2 = vadd.f32 %v235_v1, %v234_v0  ;;  %v239_v3 = vsub.f32 %v235_v1, %v234_v0  ;;  %s813_s20 = int_to_ptr.vmem [resolvable:$true] %s261_s20  ;;  %s815_s22 = int_to_ptr.vmem [resolvable:$true] %s274_s22 }
  0x53   : > { %s413_s29 = sshll.u32 %s674_s16, 7  ;;  %s243_s5 = scalar_lea.sflag [#allocation4], %s799_s11 }
  0x54   : > { %v237_v4 = vmul.f32 0.70710677, %v236_v2  ;;  %v240_v5 = vmul.f32 0.70710677, %v239_v3  ;;  %s820_s30 = scalar_lea.hbm %s889_s2, %s413_s29  ;;  %s825_s16 = scalar_lea.hbm %s890_s3, %s413_s29 }
  0x55   : > { %s529_s10 = scalar_lea.vmem %s813_s20, 128  ;;  %p903_p13 = scmp.ne.s32.totalorder %s895_s24, 0 }
  0x56   : > { %238 = vst [vmem:[%s226_s9] sm:$0xff] %v237_v4  ;;  %241 = vst [vmem:[%s233_s4] sm:$0xff] %v240_v5  ;;  %p530_p6 = scmp.ne.s32.totalorder %s813_s20, %s529_s10  ;;  %s631_s19 = smov [#allocation7]  }
  0x57   : > { %s533_s6 = sshll.u32 %s631_s19, 4  ;;  %s534_s6 = int_to_ptr.vmem [resolvable:$false] %s533_s6 }
  0x58   : > { %p531_p7 = pnand %p530_p6, %p903_p13  ;;  %s535_s8 = scalar_lea.vmem %s534_s6, 256 }
  0x59   : > { %p536_p10 = scmp.lt.s32.totalorder %s813_s20, %s534_s6  ;;  %p537_p2 = scmp.lt.s32.totalorder %s535_s8, %s529_s10 }
  0x5a   : > { %p532_p8 = pneg %p531_p7 }
  0x5b   : > { %p538_p4 = por %p537_p2, %p536_p10 }
  0x5d   : > { %p539_p5 = pnand %p538_p4, %p532_p8 }
  0x5f   : > { %542 = shalt.err (!%p539_p5)
}
  0x60   : > { %s543_s7 = scalar_lea.hbm %s820_s30, 128  ;;  %s547_s4 = scalar_lea.hbm %s889_s2, 256 }
  0x61   : > { %p544_p9 = scmp.ne.s32.totalorder %s820_s30, %s543_s7  ;;  %p548_p12 = scmp.lt.s32.totalorder %s820_s30, %s889_s2 }
  0x62   : > { %p549_p1 = scmp.lt.s32.totalorder %s547_s4, %s543_s7 }
  0x63   : > { %p545_p0 = pnand %p544_p9, %p903_p13 }
  0x64   : > { %p550_p3 = por %p549_p1, %p548_p12 }
  0x65   : > { %p546_p11 = pneg %p545_p0 }
  0x67   : > { %p551_p6 = pnand %p550_p3, %p546_p11 }
  0x69   : > { %554 = shalt.err (!%p551_p6)
}
  0x6a   : > { %421 = dma.vmem_to_hbm [thread:$0]  (%p903_p13), %s813_s20, 128, %s820_s30, %s243_s5  }
  0x6b   : > { %s248_s27 = scalar_lea.sflag [#allocation9], %s799_s11  ;;  %s555_s28 = scalar_lea.vmem %s815_s22, 128 }
  0x6c   : > { %p556_p7 = scmp.ne.s32.totalorder %s815_s22, %s555_s28  ;;  %s632_s26 = smov [#allocation8]  }
  0x6d   : > { %s559_s10 = sshll.u32 %s632_s26, 4  ;;  %s560_s10 = int_to_ptr.vmem [resolvable:$false] %s559_s10 }
  0x6e   : > { %p557_p8 = pnand %p556_p7, %p903_p13  ;;  %s561_s19 = scalar_lea.vmem %s560_s10, 256 }
  0x6f   : > { %p562_p2 = scmp.lt.s32.totalorder %s815_s22, %s560_s10  ;;  %p563_p4 = scmp.lt.s32.totalorder %s561_s19, %s555_s28 }
  0x70   : > { %p558_p10 = pneg %p557_p8 }
  0x71   : > { %p564_p5 = por %p563_p4, %p562_p2 }
  0x73   : > { %p565_p9 = pnand %p564_p5, %p558_p10 }
  0x75   : > { %568 = shalt.err (!%p565_p9)
}
  0x76   : > { %s569_s20 = scalar_lea.hbm %s825_s16, 128  ;;  %s573_s5 = scalar_lea.hbm %s890_s3, 256 }
  0x77   : > { %p570_p0 = scmp.ne.s32.totalorder %s825_s16, %s569_s20  ;;  %p574_p1 = scmp.lt.s32.totalorder %s825_s16, %s890_s3 }
  0x78   : > { %p575_p3 = scmp.lt.s32.totalorder %s573_s5, %s569_s20 }
  0x79   : > { %p571_p11 = pnand %p570_p0, %p903_p13 }
  0x7a   : > { %p576_p6 = por %p575_p3, %p574_p1 }
  0x7b   : > { %p572_p12 = pneg %p571_p11 }
  0x7d   : > { %p577_p7 = pnand %p576_p6, %p572_p12 }
  0x7f   : > { %580 = shalt.err (!%p577_p7)
}
  0x80   : > { %422 = dma.vmem_to_hbm [thread:$0]  (%p903_p13), %s815_s22, 128, %s825_s16, %s248_s27  }
  0x81 PF: > { %s286_s7 = sand.u32 1, %s615_s12   ;;  %p904_p8 = scmp.ne.s32.totalorder %s896_s25, 0 }
  0x82   : > { %p905_p10 = scmp.ge.s32.totalorder %s627_s15, 2  ;;  %s287_s17 = scalar_lea.sflag [#allocation4], %s286_s7 }
  0x84   : > { %p433_p2 = pnand %p905_p10, %p904_p8 }
  0x86   : > { %p434_p4 = pneg %p433_p2 }
  0x88   : > { %606 = dma.done.wait (%p434_p4), %s287_s17, 128  }
  0x89   : > { %608 = vsyncadd (%p434_p4), %s287_s17, 4294967168  ;;  %s296_s9 = scalar_lea.sflag [#allocation9], %s286_s7 }
  0x8a   : > { %610 = dma.done.wait (%p434_p4), %s296_s9, 128  }
  0x8b   : > { %612 = vsyncadd (%p434_p4), %s296_s9, 4294967168  ;;  %p23_p13 = scmp.ge.s32.totalorder %s678_s18, 4   ;;  %s906_s12 = smov %s619_s13 }
  0x8c   : > { %s907_s13 = smov %s623_s14  ;;  %s908_s14 = smov %s690_s21 }
  0x8d   : > { %s909_s15 = smov %s678_s18  ;;  %25 = sbr.rel (!%p23_p13) target bundleno = 9 (0x9), region = 103 }
  0x92   :  { %301 = vsyncpa [#allocation3], 1 }
  0x93   :  { %303 = vsyncpa [#allocation3 + $0x1], 1 }
  0x94   :  { %304 = vsyncpa [#allocation6], 1 }
  0x95   :  { %306 = vsyncpa [#allocation6 + $0x1], 1 }
  0x96   :  { %307 = vsyncpa [#allocation4], 1 }
  0x97   :  { %309 = vsyncpa [#allocation4 + $0x1], 1 }
  0x98   :  { %310 = vsyncpa [#allocation9], 1 }
  0x99   :  { %312 = vsyncpa [#allocation9 + $0x1], 1 }

</bundles_post_ra>
